<compile_context>
chip_gen: v7x
topology: tpu7x:2x2x1
jax: 0.10.0
libtpu: 0.0.40
codegen_flags: <defaults>
</compile_context>

<pallas_src>
import math
import jax
import jax.numpy as jnp
from jax import lax
from jax.experimental import pallas as pl
from jax.experimental.pallas import tpu as pltpu

EPS = 1e-5        # nn.LayerNorm default
LANE = 128
SUBLANE = 8


def _round_up(x, m):
    return (x + m - 1) // m * m


def _actor_kernel(x_ref,
                  w1_ref, b1_ref, g1_ref, be1_ref,
                  w2_ref, b2_ref, g2_ref, be2_ref,
                  w3_ref, b3_ref,
                  o_ref):
    # Feature-major activations: x_ref is (D_in, TB) -- features on sublanes,
    # batch on lanes.  All weights / LN params are VMEM-resident across the grid.
    h = x_ref[...]

    def linear_ln_relu(h, w_ref, b_ref, g_ref, be_ref):
        # (H_out, H_in) @ (H_in, TB) -> (H_out, TB); MXU N dim = TB (full lanes).
        h = jnp.dot(w_ref[...], h, preferred_element_type=jnp.float32) + b_ref[...]
        # LayerNorm over the feature axis (axis 0) = sublane reduction.
        # Two-pass (PyTorch) formulation for numerical parity.
        mu = jnp.mean(h, axis=0, keepdims=True)          # (1, TB)
        hc = h - mu
        var = jnp.mean(hc * hc, axis=0, keepdims=True)   # (1, TB)
        h = hc * lax.rsqrt(var + EPS)
        h = h * g_ref[...] + be_ref[...]                  # (H,1) lane-broadcasts
        return jnp.maximum(h, 0.0)                        # ReLU

    h = linear_ln_relu(h, w1_ref, b1_ref, g1_ref, be1_ref)
    h = linear_ln_relu(h, w2_ref, b2_ref, g2_ref, be2_ref)

    # Final linear: (A_pad, H2) @ (H2, TB) -> (A_pad, TB); A_pad is a multiple of 8
    # sublanes, TB a multiple of 128 lanes -> unmasked, minimal-byte vst to HBM.
    out = jnp.dot(w3_ref[...], h, preferred_element_type=jnp.float32) + b3_ref[...]
    o_ref[...] = out.astype(o_ref.dtype)


def ppo_actor_forward(x, params, *, tile_b=2048):
    """x: (B, D_in) float32 -> logits (B, A) float32. Whole MLP fused, batch on lanes."""
    B, D_in = x.shape
    (w1, b1, g1, be1, w2, b2, g2, be2, w3, b3) = params   # PyTorch-native shapes
    A, H2 = w3.shape

    # --- sublane-pad logit rows: A -> multiple of 8 (zero rows, sliced away) ---
    A_pad = _round_up(A, SUBLANE)
    if A_pad != A:
        w3 = jnp.pad(w3, ((0, A_pad - A), (0, 0)))
        b3 = jnp.pad(b3, (0, A_pad - A))

    # Column vectors (H, 1): broadcast along lanes (batch) inside the kernel.
    col = lambda v: v.reshape(-1, 1)
    weights = (w1, col(b1), col(g1), col(be1),
               w2, col(b2), col(g2), col(be2),
               w3, col(b3))

    # --- batch tiling along lanes: TB rows per grid step, TB % 128 == 0 ---
    # Clamp TB to round_up(B, 128) so small batches do not over-pad.
    TB = _round_up(min(tile_b, _round_up(B, LANE)), LANE)
    B_pad = _round_up(B, TB)
    # v7x has 2 TensorCores: split into >= 2 "parallel" tiles when it costs no
    # extra padding (no-op for perf on single-TC v5e/v6e).
    if B_pad // TB == 1 and TB > LANE and (TB // 2) % LANE == 0:
        TB //= 2
    num_tiles = B_pad // TB

    # Feature-major (batch-in-lanes) input layout: (D_in, B_pad).
    if B_pad != B:
        xT = jnp.pad(x, ((0, B_pad - B), (0, 0))).T
    else:
        xT = x.T

    def resident_spec(arr):
        # Full-array block, same block index every grid step -> stays VMEM-resident.
        return pl.BlockSpec(arr.shape, lambda i: (0, 0))

    out = pl.pallas_call(
        _actor_kernel,
        out_shape=jax.ShapeDtypeStruct((A_pad, B_pad), jnp.float32),
        grid=(num_tiles,),
        in_specs=[pl.BlockSpec((D_in, TB), lambda i: (0, i))]
                 + [resident_spec(w) for w in weights],
        out_specs=pl.BlockSpec((A_pad, TB), lambda i: (0, i)),
        compiler_params=pltpu.CompilerParams(
            dimension_semantics=("parallel",)),
    )(xT, *weights)

    return out[:A, :B].T


def init_params(key, d_in, hidden, d_out):
    """nn.Linear default init (uniform +/- 1/sqrt(fan_in)); LayerNorm gamma=1, beta=0.
    PyTorch-native shapes: W (out, in), b/gamma/beta (out,)."""
    dims = [d_in] + hidden + [d_out]
    params = []
    for i, (fi, fo) in enumerate(zip(dims[:-1], dims[1:])):
        key, kw, kb = jax.random.split(key, 3)
        bound = 1.0 / math.sqrt(fi)
        w = jax.random.uniform(kw, (fo, fi), jnp.float32, -bound, bound)
        b = jax.random.uniform(kb, (fo,), jnp.float32, -bound, bound)
        params += [w, b]
        if i < len(hidden):  # hidden layers carry LayerNorm affine params
            params += [jnp.ones((fo,), jnp.float32), jnp.zeros((fo,), jnp.float32)]
    return tuple(params)


def _reference_forward(x, params):
    (w1, b1, g1, be1, w2, b2, g2, be2, w3, b3) = params

    def block(h, w, b, g, be):
        h = h @ w.T + b
        mu = h.mean(-1, keepdims=True)
        var = ((h - mu) ** 2).mean(-1, keepdims=True)
        h = (h - mu) / jnp.sqrt(var + EPS) * g + be
        return jnp.maximum(h, 0.0)

    h = block(x, w1, b1, g1, be1)
    h = block(h, w2, b2, g2, be2)
    return h @ w3.T + b3


# TODO(synk): get_discrete_action / get_continuous_action (Categorical / Normal sampling,
# log_prob, entropy) are post-forward distribution utilities, not part of forward(); they
# are left to the host-side JAX wrapper rather than the kernel.

if __name__ == "__main__":
    # net_cfg = {'channels': [32, 32], 'use_layer_norm': True, 'act_func': 'ReLU'}
    # envs.single_observation_space.shape == (16,) -> inp_channels = 16
    # discrete action space with n == 4            -> out_channels = 4
    B, D_IN, HIDDEN, N_ACT = 8, 16, [32, 32], 4

    key = jax.random.PRNGKey(0)
    key, kx = jax.random.split(key)
    x = jax.random.normal(kx, (B, D_IN), jnp.float32)
    params = init_params(key, D_IN, HIDDEN, d_out=N_ACT)

    logits = jax.block_until_ready(ppo_actor_forward(x, params))
    ref = _reference_forward(x, params)
    assert logits.shape == (B, N_ACT)
    assert jnp.allclose(logits, ref, atol=1e-4, rtol=1e-4), "mismatch vs JAX reference"

    # Multi-tile path: B not a multiple of the lane tile, several grid steps.
    key, kx2 = jax.random.split(key)
    x2 = jax.random.normal(kx2, (300, D_IN), jnp.float32)
    logits2 = jax.block_until_ready(ppo_actor_forward(x2, params, tile_b=128))
    ref2 = _reference_forward(x2, params)
    assert logits2.shape == (300, N_ACT)
    assert jnp.allclose(logits2, ref2, atol=1e-4, rtol=1e-4), "mismatch (tiled path)"

    # Default-tile path with the v7x two-tile split heuristic (B = 512 -> 2 x 256).
    key, kx3 = jax.random.split(key)
    x3 = jax.random.normal(kx3, (512, D_IN), jnp.float32)
    logits3 = jax.block_until_ready(ppo_actor_forward(x3, params))
    ref3 = _reference_forward(x3, params)
    assert logits3.shape == (512, N_ACT)
    assert jnp.allclose(logits3, ref3, atol=1e-4, rtol=1e-4), "mismatch (split path)"

    print("KERNEL_OK")
</pallas_src>

<mosaic_0001>
module attributes {stable_mosaic.version = 11 : i64} {
  func.func @_actor_kernel(%arg0: i32, %arg1: memref<16x128xf32, #tpu.memory_space<vmem>>, %arg2: memref<32x16xf32, #tpu.memory_space<vmem>>, %arg3: memref<32x1xf32, #tpu.memory_space<vmem>>, %arg4: memref<32x1xf32, #tpu.memory_space<vmem>>, %arg5: memref<32x1xf32, #tpu.memory_space<vmem>>, %arg6: memref<32x32xf32, #tpu.memory_space<vmem>>, %arg7: memref<32x1xf32, #tpu.memory_space<vmem>>, %arg8: memref<32x1xf32, #tpu.memory_space<vmem>>, %arg9: memref<32x1xf32, #tpu.memory_space<vmem>>, %arg10: memref<8x32xf32, #tpu.memory_space<vmem>>, %arg11: memref<8x1xf32, #tpu.memory_space<vmem>>, %arg12: memref<8x128xf32, #tpu.memory_space<vmem>>) attributes {dimension_semantics = [#tpu.dimension_semantics<parallel>], iteration_bounds = array<i64: 1>, scalar_prefetch = 0 : i64, scratch_operands = 0 : i64, tpu.core_type = #tpu.core_type<tc>, window_params = [{transform_indices = @transform_0, window_bounds = array<i64: 16, 128>}, {pipeline_mode = #tpu.pipeline_mode<synchronous>, transform_indices = @transform_1, window_bounds = array<i64: 32, 16>}, {pipeline_mode = #tpu.pipeline_mode<synchronous>, transform_indices = @transform_2, window_bounds = array<i64: 32, 1>}, {pipeline_mode = #tpu.pipeline_mode<synchronous>, transform_indices = @transform_3, window_bounds = array<i64: 32, 1>}, {pipeline_mode = #tpu.pipeline_mode<synchronous>, transform_indices = @transform_4, window_bounds = array<i64: 32, 1>}, {pipeline_mode = #tpu.pipeline_mode<synchronous>, transform_indices = @transform_5, window_bounds = array<i64: 32, 32>}, {pipeline_mode = #tpu.pipeline_mode<synchronous>, transform_indices = @transform_6, window_bounds = array<i64: 32, 1>}, {pipeline_mode = #tpu.pipeline_mode<synchronous>, transform_indices = @transform_7, window_bounds = array<i64: 32, 1>}, {pipeline_mode = #tpu.pipeline_mode<synchronous>, transform_indices = @transform_8, window_bounds = array<i64: 32, 1>}, {pipeline_mode = #tpu.pipeline_mode<synchronous>, transform_indices = @transform_9, window_bounds = array<i64: 8, 32>}, {pipeline_mode = #tpu.pipeline_mode<synchronous>, transform_indices = @transform_10, window_bounds = array<i64: 8, 1>}, {transform_indices = @transform_11, window_bounds = array<i64: 8, 128>}]} {
    %c0 = arith.constant 0 : index
    %c0_0 = arith.constant 0 : index
    %0 = vector.load %arg1[%c0, %c0_0] : memref<16x128xf32, #tpu.memory_space<vmem>>, vector<16x128xf32>
    %c0_1 = arith.constant 0 : index
    %c0_2 = arith.constant 0 : index
    %1 = vector.load %arg2[%c0_1, %c0_2] : memref<32x16xf32, #tpu.memory_space<vmem>>, vector<32x16xf32>
    %cst = arith.constant dense<0.000000e+00> : vector<32x128xf32>
    %2 = tpu.matmul %1, %0, %cst {dimension_numbers = #tpu.dot_dimension_numbers<[1], [0], [0], [1], [0, 0, 1, 1], [], []>} : vector<32x16xf32>, vector<16x128xf32>, vector<32x128xf32> -> vector<32x128xf32>
    %c0_3 = arith.constant 0 : index
    %c0_4 = arith.constant 0 : index
    %3 = vector.load %arg3[%c0_3, %c0_4] : memref<32x1xf32, #tpu.memory_space<vmem>>, vector<32x1xf32>
    %4 = vector.broadcast %3 : vector<32x1xf32> to vector<32x128xf32>
    %5 = arith.addf %2, %4 : vector<32x128xf32>
    %cst_5 = arith.constant dense<0.000000e+00> : vector<128xf32>
    %6 = vector.multi_reduction <add>, %5, %cst_5 [0] : vector<32x128xf32> to vector<128xf32>
    %7 = vector.shape_cast %6 : vector<128xf32> to vector<1x128xf32>
    %cst_6 = arith.constant 3.200000e+01 : f32
    %8 = vector.broadcast %cst_6 : f32 to vector<1x128xf32>
    %9 = arith.divf %7, %8 : vector<1x128xf32>
    %10 = vector.broadcast %9 : vector<1x128xf32> to vector<32x128xf32>
    %11 = arith.subf %5, %10 : vector<32x128xf32>
    %12 = arith.mulf %11, %11 : vector<32x128xf32>
    %cst_7 = arith.constant dense<0.000000e+00> : vector<128xf32>
    %13 = vector.multi_reduction <add>, %12, %cst_7 [0] : vector<32x128xf32> to vector<128xf32>
    %14 = vector.shape_cast %13 : vector<128xf32> to vector<1x128xf32>
    %cst_8 = arith.constant 3.200000e+01 : f32
    %15 = vector.broadcast %cst_8 : f32 to vector<1x128xf32>
    %16 = arith.divf %14, %15 : vector<1x128xf32>
    %cst_9 = arith.constant 9.99999974E-6 : f32
    %17 = vector.broadcast %cst_9 : f32 to vector<1x128xf32>
    %18 = arith.addf %16, %17 : vector<1x128xf32>
    %19 = math.rsqrt %18 : vector<1x128xf32>
    %20 = vector.broadcast %19 : vector<1x128xf32> to vector<32x128xf32>
    %21 = arith.mulf %11, %20 : vector<32x128xf32>
    %c0_10 = arith.constant 0 : index
    %c0_11 = arith.constant 0 : index
    %22 = vector.load %arg4[%c0_10, %c0_11] : memref<32x1xf32, #tpu.memory_space<vmem>>, vector<32x1xf32>
    %23 = vector.broadcast %22 : vector<32x1xf32> to vector<32x128xf32>
    %24 = arith.mulf %21, %23 : vector<32x128xf32>
    %c0_12 = arith.constant 0 : index
    %c0_13 = arith.constant 0 : index
    %25 = vector.load %arg5[%c0_12, %c0_13] : memref<32x1xf32, #tpu.memory_space<vmem>>, vector<32x1xf32>
    %26 = vector.broadcast %25 : vector<32x1xf32> to vector<32x128xf32>
    %27 = arith.addf %24, %26 : vector<32x128xf32>
    %cst_14 = arith.constant 0.000000e+00 : f32
    %28 = vector.broadcast %cst_14 : f32 to vector<32x128xf32>
    %29 = arith.maximumf %27, %28 : vector<32x128xf32>
    %c0_15 = arith.constant 0 : index
    %c0_16 = arith.constant 0 : index
    %30 = vector.load %arg6[%c0_15, %c0_16] : memref<32x32xf32, #tpu.memory_space<vmem>>, vector<32x32xf32>
    %cst_17 = arith.constant dense<0.000000e+00> : vector<32x128xf32>
    %31 = tpu.matmul %30, %29, %cst_17 {dimension_numbers = #tpu.dot_dimension_numbers<[1], [0], [0], [1], [0, 0, 1, 1], [], []>} : vector<32x32xf32>, vector<32x128xf32>, vector<32x128xf32> -> vector<32x128xf32>
    %c0_18 = arith.constant 0 : index
    %c0_19 = arith.constant 0 : index
    %32 = vector.load %arg7[%c0_18, %c0_19] : memref<32x1xf32, #tpu.memory_space<vmem>>, vector<32x1xf32>
    %33 = vector.broadcast %32 : vector<32x1xf32> to vector<32x128xf32>
    %34 = arith.addf %31, %33 : vector<32x128xf32>
    %cst_20 = arith.constant dense<0.000000e+00> : vector<128xf32>
    %35 = vector.multi_reduction <add>, %34, %cst_20 [0] : vector<32x128xf32> to vector<128xf32>
    %36 = vector.shape_cast %35 : vector<128xf32> to vector<1x128xf32>
    %cst_21 = arith.constant 3.200000e+01 : f32
    %37 = vector.broadcast %cst_21 : f32 to vector<1x128xf32>
    %38 = arith.divf %36, %37 : vector<1x128xf32>
    %39 = vector.broadcast %38 : vector<1x128xf32> to vector<32x128xf32>
    %40 = arith.subf %34, %39 : vector<32x128xf32>
    %41 = arith.mulf %40, %40 : vector<32x128xf32>
    %cst_22 = arith.constant dense<0.000000e+00> : vector<128xf32>
    %42 = vector.multi_reduction <add>, %41, %cst_22 [0] : vector<32x128xf32> to vector<128xf32>
    %43 = vector.shape_cast %42 : vector<128xf32> to vector<1x128xf32>
    %cst_23 = arith.constant 3.200000e+01 : f32
    %44 = vector.broadcast %cst_23 : f32 to vector<1x128xf32>
    %45 = arith.divf %43, %44 : vector<1x128xf32>
    %cst_24 = arith.constant 9.99999974E-6 : f32
    %46 = vector.broadcast %cst_24 : f32 to vector<1x128xf32>
    %47 = arith.addf %45, %46 : vector<1x128xf32>
    %48 = math.rsqrt %47 : vector<1x128xf32>
    %49 = vector.broadcast %48 : vector<1x128xf32> to vector<32x128xf32>
    %50 = arith.mulf %40, %49 : vector<32x128xf32>
    %c0_25 = arith.constant 0 : index
    %c0_26 = arith.constant 0 : index
    %51 = vector.load %arg8[%c0_25, %c0_26] : memref<32x1xf32, #tpu.memory_space<vmem>>, vector<32x1xf32>
    %52 = vector.broadcast %51 : vector<32x1xf32> to vector<32x128xf32>
    %53 = arith.mulf %50, %52 : vector<32x128xf32>
    %c0_27 = arith.constant 0 : index
    %c0_28 = arith.constant 0 : index
    %54 = vector.load %arg9[%c0_27, %c0_28] : memref<32x1xf32, #tpu.memory_space<vmem>>, vector<32x1xf32>
    %55 = vector.broadcast %54 : vector<32x1xf32> to vector<32x128xf32>
    %56 = arith.addf %53, %55 : vector<32x128xf32>
    %cst_29 = arith.constant 0.000000e+00 : f32
    %57 = vector.broadcast %cst_29 : f32 to vector<32x128xf32>
    %58 = arith.maximumf %56, %57 : vector<32x128xf32>
    %c0_30 = arith.constant 0 : index
    %c0_31 = arith.constant 0 : index
    %59 = vector.load %arg10[%c0_30, %c0_31] : memref<8x32xf32, #tpu.memory_space<vmem>>, vector<8x32xf32>
    %cst_32 = arith.constant dense<0.000000e+00> : vector<8x128xf32>
    %60 = tpu.matmul %59, %58, %cst_32 {dimension_numbers = #tpu.dot_dimension_numbers<[1], [0], [0], [1], [0, 0, 1, 1], [], []>} : vector<8x32xf32>, vector<32x128xf32>, vector<8x128xf32> -> vector<8x128xf32>
    %c0_33 = arith.constant 0 : index
    %c0_34 = arith.constant 0 : index
    %61 = vector.load %arg11[%c0_33, %c0_34] : memref<8x1xf32, #tpu.memory_space<vmem>>, vector<8x1xf32>
    %62 = vector.broadcast %61 : vector<8x1xf32> to vector<8x128xf32>
    %63 = arith.addf %60, %62 : vector<8x128xf32>
    %c0_35 = arith.constant 0 : index
    %c0_36 = arith.constant 0 : index
    %64 = vector.load %arg12[%c0_35, %c0_36] : memref<8x128xf32, #tpu.memory_space<vmem>>, vector<8x128xf32>
    tpu.vector_store %arg12[%c0_35, %c0_36], %63 {strides = array<i32>} : memref<8x128xf32, #tpu.memory_space<vmem>>, vector<8x128xf32>,
    return
  }
  func.func @transform_0(%arg0: i32) -> (i32, i32) {
    %c0_i32 = arith.constant 0 : i32
    %c0_i32_0 = arith.constant 0 : i32
    return %c0_i32, %arg0 : i32, i32
  }
  func.func @transform_1(%arg0: i32) -> (i32, i32) {
    %c0_i32 = arith.constant 0 : i32
    %c0_i32_0 = arith.constant 0 : i32
    %c0_i32_1 = arith.constant 0 : i32
    return %c0_i32, %c0_i32_0 : i32, i32
  }
  func.func @transform_2(%arg0: i32) -> (i32, i32) {
    %c0_i32 = arith.constant 0 : i32
    %c0_i32_0 = arith.constant 0 : i32
    %c0_i32_1 = arith.constant 0 : i32
    return %c0_i32, %c0_i32_0 : i32, i32
  }
  func.func @transform_3(%arg0: i32) -> (i32, i32) {
    %c0_i32 = arith.constant 0 : i32
    %c0_i32_0 = arith.constant 0 : i32
    %c0_i32_1 = arith.constant 0 : i32
    return %c0_i32, %c0_i32_0 : i32, i32
  }
  func.func @transform_4(%arg0: i32) -> (i32, i32) {
    %c0_i32 = arith.constant 0 : i32
    %c0_i32_0 = arith.constant 0 : i32
    %c0_i32_1 = arith.constant 0 : i32
    return %c0_i32, %c0_i32_0 : i32, i32
  }
  func.func @transform_5(%arg0: i32) -> (i32, i32) {
    %c0_i32 = arith.constant 0 : i32
    %c0_i32_0 = arith.constant 0 : i32
    %c0_i32_1 = arith.constant 0 : i32
    return %c0_i32, %c0_i32_0 : i32, i32
  }
  func.func @transform_6(%arg0: i32) -> (i32, i32) {
    %c0_i32 = arith.constant 0 : i32
    %c0_i32_0 = arith.constant 0 : i32
    %c0_i32_1 = arith.constant 0 : i32
    return %c0_i32, %c0_i32_0 : i32, i32
  }
  func.func @transform_7(%arg0: i32) -> (i32, i32) {
    %c0_i32 = arith.constant 0 : i32
    %c0_i32_0 = arith.constant 0 : i32
    %c0_i32_1 = arith.constant 0 : i32
    return %c0_i32, %c0_i32_0 : i32, i32
  }
  func.func @transform_8(%arg0: i32) -> (i32, i32) {
    %c0_i32 = arith.constant 0 : i32
    %c0_i32_0 = arith.constant 0 : i32
    %c0_i32_1 = arith.constant 0 : i32
    return %c0_i32, %c0_i32_0 : i32, i32
  }
  func.func @transform_9(%arg0: i32) -> (i32, i32) {
    %c0_i32 = arith.constant 0 : i32
    %c0_i32_0 = arith.constant 0 : i32
    %c0_i32_1 = arith.constant 0 : i32
    return %c0_i32, %c0_i32_0 : i32, i32
  }
  func.func @transform_10(%arg0: i32) -> (i32, i32) {
    %c0_i32 = arith.constant 0 : i32
    %c0_i32_0 = arith.constant 0 : i32
    %c0_i32_1 = arith.constant 0 : i32
    return %c0_i32, %c0_i32_0 : i32, i32
  }
  func.func @transform_11(%arg0: i32) -> (i32, i32) {
    %c0_i32 = arith.constant 0 : i32
    %c0_i32_0 = arith.constant 0 : i32
    return %c0_i32, %arg0 : i32, i32
  }
}

</mosaic_0001>

<bundles_post_ra>
// kernel: tpu_custom_call.1
= control target key start
LH: loop header
LB: loop body
LE: loop exit
PB: predicated region body
PF: predicated region fallthrough
CT: control target
= control target key end

     0   :  { %vm69_vm0 = vcmask 130048   ;;  %v693_v4 = vmov 0   ;;  %s889_s0 = inlined_call_operand.vmem [shape: f32[16,128], index: 0, kind: input, shape index: {}]   ;;  %s890_s1 = inlined_call_operand.vmem [shape: f32[32,16], index: 1, kind: input, shape index: {}]   ;;  %s891_s2 = inlined_call_operand.vmem [shape: f32[32,1], index: 2, kind: input, shape index: {}]   ;;  %s892_s3 = inlined_call_operand.vmem [shape: f32[32,1], index: 3, kind: input, shape index: {}]   ;;  %s893_s4 = inlined_call_operand.vmem [shape: f32[32,1], index: 4, kind: input, shape index: {}]   ;;  %s894_s5 = inlined_call_operand.vmem [shape: f32[32,32], index: 5, kind: input, shape index: {}]   ;;  %s895_s6 = inlined_call_operand.vmem [shape: f32[32,1], index: 6, kind: input, shape index: {}]   ;;  %s896_s7 = inlined_call_operand.vmem [shape: f32[32,1], index: 7, kind: input, shape index: {}]   ;;  %s897_s8 = inlined_call_operand.vmem [shape: f32[32,1], index: 8, kind: input, shape index: {}]   ;;  %s898_s9 = inlined_call_operand.vmem [shape: f32[8,32], index: 9, kind: input, shape index: {}]   ;;  %s899_s10 = inlined_call_operand.vmem [shape: f32[8,1], index: 10, kind: input, shape index: {}]   ;;  %s900_s11 = inlined_call_operand.hbm [shape: f32[8,128], index: 11, kind: output, shape index: {}]  }
   0x1   :  { %v39_v0 = vld [vmem:[%s889_s0] sm:$0xff]  ;;  %v40_v1 = vld [vmem:[%s889_s0 + $0x8] sm:$0xff]  ;;  %663 = vset.pattern.permute.xlu0 %v693_v4  ;;  %664 = vset.pattern.permute.xlu1 %v693_v4  ;;  %v47_v6 = vld [vmem:[%s891_s2 + $0x10] sm:$0xff] }
   0x2   :  { %v41_v2 = vld [vmem:[%s890_s1] sm:$0xff]  ;;  %v640_v3 = vpack.c.bf16 %v40_v1, %v39_v0  ;;  %v42_v7 = vld [vmem:[%s890_s1 + $0x8] sm:$0xff]  ;;  %61 = vperm.xlu1 %664, %v47_v6   ;;  %v43_v9 = vld [vmem:[%s890_s1 + $0x10] sm:$0xff] }
   0x3   :  { %609 = vmatprep.mubr.msk.f32.mxu0 %vm69_vm0, %v41_v2  ;;  %v45_v5 = vld [vmem:[%s891_s2] sm:$0xff]  ;;  %v46_v8 = vld [vmem:[%s891_s2 + $0x8] sm:$0xff]  ;;  %v48_v10 = vld [vmem:[%s891_s2 + $0x18] sm:$0xff] }
   0x4   :  { %641 = vmatprep.subr.bf16.mxu0 %v640_v3  ;;  %51 = vperm.xlu0 %663, %v45_v5   ;;  %v44_v11 = vld [vmem:[%s890_s1 + $0x18] sm:$0xff]  ;;  %v202_v12 = vld [vmem:[%s892_s3] sm:$0xff]  ;;  %v203_v13 = vld [vmem:[%s892_s3 + $0x8] sm:$0xff] }
   0x5   :  { %643 = vmatpush3.bf16.msra.mxu0 %v640_v3 }
   0x6   :  { %66 = vperm.xlu1 %664, %v48_v10  }
   0x8   :  { %610 = vmatmul.mubr.msk.f32.vlgmr.msra.gmra.mrb[0].mxu0 %vm69_vm0, %v42_v7  ;;  %56 = vperm.xlu0 %663, %v46_v8  }
   0x9   :  { %612 = vmatprep.mubr.msk.f32.mxu0 %vm69_vm0, %v43_v9 }
   0xa   :  { %16 = vsyncpa [#allocation3], 0  ;;  %v230_v14 = vld [vmem:[%s893_s4] sm:$0xff]  ;;  %213 = vperm.xlu1 %664, %v203_v13   ;;  %v231_v15 = vld [vmem:[%s893_s4 + $0x8] sm:$0xff]  ;;  %vm290_vm1 = vcmask 261120   ;;  %vm695_vm2 = vmmov 0  }
   0xb   :  { %v204_v16 = vld [vmem:[%s892_s3 + $0x10] sm:$0xff]  ;;  %v205_v17 = vld [vmem:[%s892_s3 + $0x18] sm:$0xff]  ;;  %v266_v20 = vld [vmem:[%s895_s6] sm:$0xff]  ;;  %s697_s17 = smov [#allocation2]  }
   0xc   :  { %613 = vmatmul.mubr.msk.f32.gmra.mrb[2].mxu0 %vm69_vm0, %v44_v11  ;;  %208 = vperm.xlu0 %663, %v202_v12   ;;  %v232_v18 = vld [vmem:[%s893_s4 + $0x10] sm:$0xff]  ;;  %v233_v19 = vld [vmem:[%s893_s4 + $0x18] sm:$0xff]  ;;  %v267_v21 = vld [vmem:[%s895_s6 + $0x8] sm:$0xff]  ;;  %s569_s4 = sshll.u32 %s697_s17, 4  ;;  %s570_s4 = int_to_ptr.vmem [resolvable:$true] %s569_s4 }
   0xd   :  { %v268_v22 = vld [vmem:[%s895_s6 + $0x10] sm:$0xff]  ;;  %v269_v23 = vld [vmem:[%s895_s6 + $0x18] sm:$0xff]  ;;  %v422_v24 = vld [vmem:[%s896_s7] sm:$0xff]  ;;  %s669_s18 = scalar_lea.vmem %s570_s4, 128  ;;  %p674_p1 = scmp.lt.s32.totalorder %s570_s4, %s570_s4 }
   0xe   :  { %241 = vperm.xlu1 %664, %v231_v15   ;;  %v423_v25 = vld [vmem:[%s896_s7 + $0x8] sm:$0xff]  ;;  %v450_v26 = vld [vmem:[%s897_s8] sm:$0xff]  ;;  %v424_v28 = vld [vmem:[%s896_s7 + $0x10] sm:$0xff]  ;;  %p670_p0 = scmp.ne.s32.totalorder %s570_s4, %s669_s18  ;;  %p675_p2 = scmp.lt.s32.totalorder %s669_s18, %s669_s18 }
   0xf   :  { %v451_v27 = vld [vmem:[%s897_s8 + $0x8] sm:$0xff]  ;;  %v425_v29 = vld [vmem:[%s896_s7 + $0x18] sm:$0xff]  ;;  %v452_v30 = vld [vmem:[%s897_s8 + $0x10] sm:$0xff] }
  0x10   :  { %236 = vperm.xlu0 %663, %v230_v14   ;;  %v453_v31 = vld [vmem:[%s897_s8 + $0x18] sm:$0xff]  ;;  %v483_v32 = vld [vmem:[%s899_s10] sm:$0xff]  ;;  %p676_p3 = por %p675_p2, %p674_p1 }
  0x11   :  { %v262_v33 = vld [vmem:[%s894_s5] sm:$0xff] }
  0x12   :  { %223 = vperm.xlu1 %664, %v205_v17   ;;  %623 = vmatprep.mubr.msk.f32.mxu1 %vm290_vm1, %v262_v33  ;;  %p677_p4 = pnand %p676_p3, %p670_p0 }
  0x14   :  { %218 = vperm.xlu0 %663, %v204_v16  }
  0x16   :  { %251 = vperm.xlu1 %664, %v233_v19  }
  0x18   :  { %246 = vperm.xlu0 %663, %v232_v18  }
  0x1a   :  { %277 = vperm.xlu1 %664, %v267_v21  }
  0x1c   :  { %272 = vperm.xlu0 %663, %v266_v20  }
  0x1e   :  { %287 = vperm.xlu1 %664, %v269_v23  }
  0x20   :  { %282 = vperm.xlu0 %663, %v268_v22  }
  0x22   :  { %433 = vperm.xlu1 %664, %v423_v25  }
  0x24   :  { %428 = vperm.xlu0 %663, %v422_v24  }
  0x26   :  { %461 = vperm.xlu1 %664, %v451_v27  }
  0x28   :  { %456 = vperm.xlu0 %663, %v450_v26  }
  0x2a   :  { %443 = vperm.xlu1 %664, %v425_v29  }
  0x2c   :  { %438 = vperm.xlu0 %663, %v424_v28  }
  0x2e   :  { %471 = vperm.xlu1 %664, %v453_v31  }
  0x30   :  { %466 = vperm.xlu0 %663, %v452_v30  }
  0x34   :  { %486 = vperm.xlu0 %663, %v483_v32  }
  0x81   :  { %v62_v37 = vpop.permute.xlu1 %61 }
  0x83   :  { %v52_v34 = vpop.permute.xlu0 %51 }
  0x85   :  { %v67_v45 = vpop.permute.xlu1 %66 }
  0x87   :  { %v57_v35 = vpop.permute.xlu0 %56 }
  0x89   :  { %v214_v10 = vpop.permute.xlu1 %213 }
  0x8b   :  { %v209_v9 = vpop.permute.xlu0 %208 }
  0x8d   :  { %v242_v14 = vpop.permute.xlu1 %241 }
  0x8f   :  { %v237_v13 = vpop.permute.xlu0 %236 }
  0x91   :  { %v224_v16 = vpop.permute.xlu1 %223 }
  0x93   :  { %v219_v15 = vpop.permute.xlu0 %218 }
  0x95   :  { %v252_v27 = vpop.permute.xlu1 %251 }
  0x97   :  { %v247_v26 = vpop.permute.xlu0 %246 }
  0xdb   :  { %v611_v36 = vpop.f32.mrb[0].mxu0 }
  0xdc   :  { %v154_v38 = vadd.f32 %v611_v36, %v57_v35  ;;  %v148_v39 = vpop.f32.mrb[1].mxu0 }
  0xdd   :  { %v149_v40 = vadd.f32 %v148_v39, %v52_v34  ;;  %v264_v39 = vld [vmem:[%s894_s5 + $0x10] sm:$0xff] }
  0xdf   :  { %v167_v41 = vadd.f32 %v154_v38, %v149_v40  ;;  %v614_v42 = vpop.f32.mrb[2].mxu0 }
  0xe0   :  { %v158_v43 = vpop.f32.mrb[3].mxu0  ;;  %v164_v46 = vadd.f32 %v614_v42, %v67_v45  ;;  %v696_v42 = vmov 0.0  }
  0xe1   :  { %v159_v44 = vadd.f32 %v158_v43, %v62_v37  ;;  %637 = vmatprep.mubr.msk.f32.mxu0 %vm695_vm2, %v696_v42  ;;  %v273_v43 = vpop.permute.xlu0 %272 }
  0xe3   :  { %v168_v47 = vadd.f32 %v167_v41, %v159_v44  ;;  %v694_v41 = vmov 0.0|0.0  }
  0xe4   :  { %652 = vmatprep.subr.bf16.mxu0 %v694_v41 }
  0xe5   :  { %v169_v48 = vadd.f32 %v168_v47, %v164_v46 }
  0xe7   :  { %v170_v49 = vrot.slane %v169_v48, 4 }
  0xe9   :  { %v171_v50 = vadd.f32 %v170_v49, %v169_v48 }
  0xeb   :  { %v172_v51 = vrot.slane %v171_v50, 2 }
  0xed   :  { %v173_v52 = vadd.f32 %v172_v51, %v171_v50  ;;  %v283_v51 = vpop.permute.xlu0 %282 }
  0xef   :  { %v174_v53 = vrot.slane %v173_v52, 1 }
  0xf1   :  { %v175_v54 = vadd.f32 %v174_v53, %v173_v52 }
  0xf3   :  { %v177_v55 = vmul.f32 0.03125, %v175_v54 }
  0xf5   :  { %v178_v56 = vsub.f32 %v149_v40, %v177_v55  ;;  %v179_v57 = vsub.f32 %v154_v38, %v177_v55  ;;  %v180_v58 = vsub.f32 %v159_v44, %v177_v55  ;;  %v181_v59 = vsub.f32 %v164_v46, %v177_v55  ;;  %v263_v38 = vld [vmem:[%s894_s5 + $0x8] sm:$0xff]  ;;  %v265_v40 = vld [vmem:[%s894_s5 + $0x18] sm:$0xff]  ;;  %v278_v44 = vpop.permute.xlu1 %277 }
  0xf7   :  { %v182_v60 = vmul.f32 %v178_v56, %v178_v56  ;;  %v183_v61 = vmul.f32 %v179_v57, %v179_v57  ;;  %v184_v62 = vmul.f32 %v180_v58, %v180_v58  ;;  %v185_v0 = vmul.f32 %v181_v59, %v181_v59 }
  0xf9   :  { %v186_v63 = vadd.f32 %v183_v61, %v182_v60  ;;  %v288_v54 = vpop.permute.xlu1 %287 }
  0xfb   :  { %v187_v1 = vadd.f32 %v186_v63, %v184_v62 }
  0xfd   :  { %v188_v2 = vadd.f32 %v187_v1, %v185_v0 }
  0xff   :  { %v189_v3 = vrot.slane %v188_v2, 4 }
 0x101   :  { %v190_v4 = vadd.f32 %v189_v3, %v188_v2 }
 0x103   :  { %v191_v5 = vrot.slane %v190_v4, 2 }
 0x105   :  { %v192_v6 = vadd.f32 %v191_v5, %v190_v4 }
 0x107   :  { %v193_v7 = vrot.slane %v192_v6, 1 }
 0x109   :  { %v194_v8 = vadd.f32 %v193_v7, %v192_v6 }
 0x10b   :  { %v195_v11 = vmul.f32 0.03125, %v194_v8 }
 0x10d   :  { %v196_v12 = vadd.f32 1e-05, %v195_v11 }
 0x10f   :  { %665 = vrsqrt.f32 %v196_v12 }
 0x119   :  { %v666_v17 = vpop.eup %665 }
 0x11a   :  { %v200_v18 = vmul.f32 %v666_v17, %v180_v58  ;;  %v198_v19 = vmul.f32 %v666_v17, %v178_v56  ;;  %v199_v20 = vmul.f32 %v666_v17, %v179_v57  ;;  %v201_v21 = vmul.f32 %v666_v17, %v181_v59 }
 0x11c   :  { %v228_v22 = vmul.f32 %v219_v15, %v200_v18  ;;  %v226_v23 = vmul.f32 %v209_v9, %v198_v19  ;;  %v227_v24 = vmul.f32 %v214_v10, %v199_v20  ;;  %v229_v25 = vmul.f32 %v224_v16, %v201_v21  ;;  %v429_v18 = vpop.permute.xlu0 %428  ;;  %v434_v19 = vpop.permute.xlu1 %433 }
 0x11e   :  { %v254_v28 = vadd.f32 %v237_v13, %v226_v23  ;;  %v255_v29 = vadd.f32 %v242_v14, %v227_v24  ;;  %v256_v30 = vadd.f32 %v247_v26, %v228_v22  ;;  %v257_v31 = vadd.f32 %v252_v27, %v229_v25 }
 0x120   :  { %v258_v32 = vmax.f32 %v254_v28, 0.0  ;;  %v259_v33 = vmax.f32 %v255_v29, 0.0  ;;  %v260_v34 = vmax.f32 %v256_v30, 0.0  ;;  %v261_v35 = vmax.f32 %v257_v31, 0.0  ;;  %v457_v22 = vpop.permute.xlu0 %456  ;;  %v462_v23 = vpop.permute.xlu1 %461 }
 0x122   :  { %v644_v36 = vpack.c.bf16 %v259_v33, %v258_v32  ;;  %v648_v37 = vpack.c.bf16 %v261_v35, %v260_v34 }
 0x124   :  { %645 = vmatprep.subr.bf16.mxu1 %v644_v36  ;;  %v439_v24 = vpop.permute.xlu0 %438  ;;  %v444_v25 = vpop.permute.xlu1 %443 }
 0x125   :  { %647 = vmatpush3.bf16.msra.mxu1 %v644_v36 }
 0x126   :  { %649 = vmatprep.subr.bf16.mxu1 %v648_v37 }
 0x128   :  { %v467_v35 = vpop.permute.xlu0 %466  ;;  %v472_v36 = vpop.permute.xlu1 %471 }
 0x129   :  { %651 = vmatpush3.bf16.msra.mxu1 %v648_v37 }
 0x12c   :  { %624 = vmatmul.mubr.msk.f32.vlgmr.msra.gmra.mrb[0].mxu1 %vm290_vm1, %v263_v38 }
 0x12d   :  { %626 = vmatprep.mubr.msk.f32.mxu1 %vm290_vm1, %v264_v39 }
 0x130   :  { %627 = vmatmul.mubr.msk.f32.gmra.mrb[2].mxu1 %vm290_vm1, %v265_v40 }
 0x1ff   :  { %v625_v45 = vpop.f32.mrb[0].mxu1 }
 0x200   :  { %v375_v46 = vadd.f32 %v625_v45, %v278_v44  ;;  %v369_v47 = vpop.f32.mrb[1].mxu1 }
 0x201   :  { %v370_v48 = vadd.f32 %v369_v47, %v273_v43 }
 0x203   :  { %v388_v49 = vadd.f32 %v375_v46, %v370_v48  ;;  %v628_v50 = vpop.f32.mrb[2].mxu1 }
 0x204   :  { %v379_v52 = vpop.f32.mrb[3].mxu1  ;;  %v385_v55 = vadd.f32 %v628_v50, %v288_v54 }
 0x205   :  { %v380_v53 = vadd.f32 %v379_v52, %v283_v51 }
 0x207   :  { %v389_v56 = vadd.f32 %v388_v49, %v380_v53  ;;  %v487_v49 = vpop.permute.xlu0 %486 }
 0x209   :  { %v390_v57 = vadd.f32 %v389_v56, %v385_v55 }
 0x20b   :  { %v391_v58 = vrot.slane %v390_v57, 4 }
 0x20d   :  { %v392_v59 = vadd.f32 %v391_v58, %v390_v57 }
 0x20f   :  { %v393_v60 = vrot.slane %v392_v59, 2 }
 0x211   :  { %v394_v61 = vadd.f32 %v393_v60, %v392_v59 }
 0x213   :  { %v395_v62 = vrot.slane %v394_v61, 1 }
 0x215   :  { %v396_v63 = vadd.f32 %v395_v62, %v394_v61 }
 0x217   :  { %v397_v0 = vmul.f32 0.03125, %v396_v63 }
 0x219   :  { %v398_v1 = vsub.f32 %v370_v48, %v397_v0  ;;  %v399_v2 = vsub.f32 %v375_v46, %v397_v0  ;;  %v400_v3 = vsub.f32 %v380_v53, %v397_v0  ;;  %v401_v4 = vsub.f32 %v385_v55, %v397_v0  ;;  %v482_v48 = vld [vmem:[%s898_s9] sm:$0xff] }
 0x21b   :  { %v402_v5 = vmul.f32 %v398_v1, %v398_v1  ;;  %v403_v6 = vmul.f32 %v399_v2, %v399_v2  ;;  %v404_v7 = vmul.f32 %v400_v3, %v400_v3  ;;  %v405_v9 = vmul.f32 %v401_v4, %v401_v4 }
 0x21d   :  { %v406_v8 = vadd.f32 %v403_v6, %v402_v5 }
 0x21f   :  { %v407_v10 = vadd.f32 %v406_v8, %v404_v7 }
 0x221   :  { %v408_v11 = vadd.f32 %v407_v10, %v405_v9 }
 0x223   :  { %v409_v12 = vrot.slane %v408_v11, 4 }
 0x225   :  { %v410_v13 = vadd.f32 %v409_v12, %v408_v11 }
 0x227   :  { %v411_v14 = vrot.slane %v410_v13, 2 }
 0x229   :  { %v412_v15 = vadd.f32 %v411_v14, %v410_v13 }
 0x22b   :  { %v413_v16 = vrot.slane %v412_v15, 1 }
 0x22d   :  { %v414_v17 = vadd.f32 %v413_v16, %v412_v15 }
 0x22f   :  { %v415_v20 = vmul.f32 0.03125, %v414_v17 }
 0x231   :  { %v416_v21 = vadd.f32 1e-05, %v415_v20 }
 0x233   :  { %667 = vrsqrt.f32 %v416_v21 }
 0x23d   :  { %v668_v26 = vpop.eup %667 }
 0x23e   :  { %v420_v27 = vmul.f32 %v668_v26, %v400_v3  ;;  %v418_v28 = vmul.f32 %v668_v26, %v398_v1  ;;  %v419_v29 = vmul.f32 %v668_v26, %v399_v2  ;;  %v421_v30 = vmul.f32 %v668_v26, %v401_v4 }
 0x240   :  { %v448_v31 = vmul.f32 %v439_v24, %v420_v27  ;;  %v446_v32 = vmul.f32 %v429_v18, %v418_v28  ;;  %v447_v33 = vmul.f32 %v434_v19, %v419_v29  ;;  %v449_v34 = vmul.f32 %v444_v25, %v421_v30 }
 0x242   :  { %v476_v37 = vadd.f32 %v467_v35, %v448_v31  ;;  %v474_v38 = vadd.f32 %v457_v22, %v446_v32  ;;  %v475_v39 = vadd.f32 %v462_v23, %v447_v33  ;;  %v477_v40 = vadd.f32 %v472_v36, %v449_v34 }
 0x244   :  { %v480_v42 = vmax.f32 %v476_v37, 0.0  ;;  %v478_v43 = vmax.f32 %v474_v38, 0.0  ;;  %v479_v44 = vmax.f32 %v475_v39, 0.0  ;;  %v481_v45 = vmax.f32 %v477_v40, 0.0 }
 0x246   :  { %v653_v46 = vpack.c.bf16 %v479_v44, %v478_v43  ;;  %v656_v47 = vpack.c.bf16 %v481_v45, %v480_v42 }
 0x248   :  { %654 = vmatpush3.bf16.msra.mxu0 %v653_v46 }
 0x249   :  { %655 = vmatprep.subr.bf16.mxu0 %v694_v41 }
 0x24c   :  { %657 = vmatpush3.bf16.msra.mxu0 %v656_v47 }
 0x24f   :  { %638 = vmatmul.mubr.msk.f32.vlgmr.msra.gmra.mrb[4].mxu0 %vm290_vm1, %v482_v48 }
 0x322   :  { %v558_v50 = vpop.f32.mrb[4].mxu0 }
 0x323   :  { %v559_v51 = vadd.f32 %v558_v50, %v487_v49  ;;  %v639_v52 = vpop.f32.mrb[5].mxu0 }
 0x325   :  { %562 = vst [vmem:[#allocation2] sm:$0xff] %v559_v51 }
 0x326   :  { %680 = shalt.err (!%p677_p4)
}
 0x327   :  { %s681_s9 = scalar_lea.hbm %s900_s11, 128 }
 0x328   :  { %p682_p5 = scmp.ne.s32.totalorder %s900_s11, %s681_s9  ;;  %p685_p6 = scmp.lt.u32.totalorder %s681_s9, %s900_s11 }
 0x32a   :  { %p687_p7 = pnand %p685_p6, %p682_p5 }
 0x32c   :  { %690 = shalt.err (!%p687_p7)
}
 0x32d   :  { %572 = dma.vmem_to_hbm [thread:$0]  %s570_s4, 128, %s900_s11, [#allocation3]  }
 0x32e   :  { %691 = dma.done.wait [#allocation3], 128  }
 0x32f   :  { %692 = vsyncadd [#allocation3], 4294967168 }
 0x330   :  { %576 = vsyncpa [#allocation3], 1 }

</bundles_post_ra>
